<compile_context>
chip_gen: v7x
topology: tpu7x:2x2x1
jax: 0.10.0
libtpu: 0.0.40
codegen_flags: <defaults>
</compile_context>

<pallas_src>
import numpy as np
import jax
import jax.numpy as jnp
from jax.experimental import pallas as pl
from jax.experimental.pallas import tpu as pltpu


LANE = 128
SUBLANE = 8
NEG_INF = -1e30
TB_CAP = 512          # sweepable: 256 / 512 / 1024 (multiple of 8)


def _rup(n, m):
    return ((n + m - 1) // m) * m


def _batch_tiling(bs, tb_cap=TB_CAP):
    """Pick a batch tile: large (amortize ~0.35us/step overhead) but with >=2
    grid steps when the batch allows it, so v7x can shard across both TCs."""
    b8 = _rup(bs, SUBLANE)
    if b8 >= 2 * tb_cap:
        tb = tb_cap
    elif b8 >= 2 * SUBLANE:
        tb = min(tb_cap, _rup((b8 + 1) // 2, SUBLANE))
    else:
        tb = b8
    return tb, _rup(bs, tb)


# ----------------------------- Pallas kernel ------------------------------ #
def make_cae_kernel(offs, dims):
    """offs: column offsets of the 6 sections in the fused weight/bias slabs.
    dims: (L_pad, H1_pad, FLAT_pad, LAT_pad, CLS_pad, D1_pad)."""
    o_m1, o_m2, o_head, o_l2, o_d1, o_d2 = offs
    L_pad, H1_pad, FLAT_pad, LAT_pad, CLS_pad, D1_pad = dims

    def cae_kernel(x_ref, w_ref, b_ref, out_ref):
        f32, bf16 = jnp.float32, jnp.bfloat16
        x = x_ref[...]                                              # (TB, L_pad) bf16

        # ---- encoder: Conv1d(1->c, k1, s1) + ReLU (dense matmul form) ----
        h1 = jnp.maximum(
            jnp.dot(x, w_ref[0:L_pad, o_m1:o_m1 + H1_pad],
                    preferred_element_type=f32)
            + b_ref[:, o_m1:o_m1 + H1_pad], 0.0)
        # ---- encoder: Conv1d(c->2c, k2, s2) + Tanh (+Dropout1d = id) ----
        h2 = jnp.tanh(
            jnp.dot(h1.astype(bf16), w_ref[0:H1_pad, o_m2:o_m2 + FLAT_pad],
                    preferred_element_type=f32)
            + b_ref[:, o_m2:o_m2 + FLAT_pad])
        h2b = h2.astype(bf16)

        # ---- fused heads: [ l1 | lc ] in one lane-dense matmul ----
        head = (jnp.dot(h2b, w_ref[0:FLAT_pad, o_head:o_head + LAT_pad + CLS_pad],
                        preferred_element_type=f32)
                + b_ref[:, o_head:o_head + LAT_pad + CLS_pad])
        code = jnp.tanh(head[:, :LAT_pad])                          # pad lanes -> 0
        logits = head[:, LAT_pad:]                                  # pad lanes -> -1e30

        # log_softmax over the classifier slab (pad lanes contribute exp(-inf)=0)
        mmax = jnp.max(logits, axis=1, keepdims=True)
        lse = mmax + jnp.log(jnp.sum(jnp.exp(logits - mmax), axis=1, keepdims=True))
        logp = logits - lse

        # ---- decoder: relu(l2(code)) ----
        d0 = jnp.maximum(
            jnp.dot(code.astype(bf16), w_ref[0:LAT_pad, o_l2:o_l2 + FLAT_pad],
                    preferred_element_type=f32)
            + b_ref[:, o_l2:o_l2 + FLAT_pad], 0.0)
        # ---- ConvTranspose1d(2c->c, k2, s2) + ReLU (+Dropout1d = id) ----
        d1 = jnp.maximum(
            jnp.dot(d0.astype(bf16), w_ref[0:FLAT_pad, o_d1:o_d1 + D1_pad],
                    preferred_element_type=f32)
            + b_ref[:, o_d1:o_d1 + D1_pad], 0.0)
        # ---- ConvTranspose1d(c->1, k1, s1) + Tanh, Upsample(nearest) folded ----
        dec = jnp.tanh(
            jnp.dot(d1.astype(bf16), w_ref[0:D1_pad, o_d2:o_d2 + L_pad],
                    preferred_element_type=f32)
            + b_ref[:, o_d2:o_d2 + L_pad])

        # fused bf16 output slab: [ decoded | log_probs ], both 128-aligned stores
        out_ref[:, :L_pad] = dec.astype(out_ref.dtype)
        out_ref[:, L_pad:] = logp.astype(out_ref.dtype)

    return cae_kernel


# --------------------------- parameter utilities --------------------------- #
def _uniform(key, shape, fan_in):
    bound = 1.0 / np.sqrt(float(fan_in))
    return jax.random.uniform(key, shape, jnp.float32, -bound, bound)


def conv1d_as_matrix(W, b, L_in, stride):
    """Conv1d(weight (C_out, C_in, k)) -> (C_in*L_in, C_out*L_out) matrix + flat bias."""
    W = np.asarray(W, np.float32)
    b = np.asarray(b, np.float32)
    C_out, C_in, k = W.shape
    L_out = (L_in - k) // stride + 1
    M = np.zeros((C_in * L_in, C_out * L_out), np.float32)
    for co in range(C_out):
        for ci in range(C_in):
            for j in range(k):
                for lo in range(L_out):
                    M[ci * L_in + lo * stride + j, co * L_out + lo] += W[co, ci, j]
    bias = np.repeat(b, L_out).astype(np.float32)
    return M, bias, L_out


def convtr1d_as_matrix(W, b, L_in, stride):
    """ConvTranspose1d(weight (C_in, C_out, k)) -> matrix + flat bias."""
    W = np.asarray(W, np.float32)
    b = np.asarray(b, np.float32)
    C_in, C_out, k = W.shape
    L_out = (L_in - 1) * stride + k
    M = np.zeros((C_in * L_in, C_out * L_out), np.float32)
    for ci in range(C_in):
        for co in range(C_out):
            for li in range(L_in):
                for j in range(k):
                    M[ci * L_in + li, co * L_out + li * stride + j] += W[ci, co, j]
    bias = np.repeat(b, L_out).astype(np.float32)
    return M, bias, L_out


def nearest_upsample_matrix(L_in, L_out):
    U = np.zeros((L_in, L_out), np.float32)
    for i in range(L_out):
        U[(i * L_in) // L_out, i] = 1.0          # PyTorch 'nearest' index rule
    return U


def _pad2(M, rows, cols):
    out = np.zeros((rows, cols), np.float32)
    out[:M.shape[0], :M.shape[1]] = M
    return out


def make_params(key, in_features, out_classes, complexity=2,
                latent_space=16, kernel_base=5):
    c = complexity
    k1, s1 = kernel_base + 2, kernel_base + 1      # conv1 / deconv2
    k2, s2 = kernel_base, kernel_base - 1          # conv2 / deconv1

    keys = jax.random.split(key, 14)
    # encoder convs
    Wc1 = _uniform(keys[0], (c, 1, k1), 1 * k1)
    bc1 = _uniform(keys[1], (c,), 1 * k1)
    Wc2 = _uniform(keys[2], (c * 2, c, k2), c * k2)
    bc2 = _uniform(keys[3], (c * 2,), c * k2)
    # decoder convs (ConvTranspose1d weight layout: (C_in, C_out, k))
    Wd1 = _uniform(keys[4], (c * 2, c, k2), c * 2 * k2)
    bd1 = _uniform(keys[5], (c,), c * 2 * k2)
    Wd2 = _uniform(keys[6], (c, 1, k1), c * k1)
    bd2 = _uniform(keys[7], (1,), c * k1)

    # spatial sizes (what PyTorch derives via self.conv(randn(1,1,in_features)))
    L = in_features
    L1 = (L - k1) // s1 + 1
    L2 = (L1 - k2) // s2 + 1
    latent_size = L2
    flat = c * 2 * latent_size

    # linear layers
    Wl1 = _uniform(keys[8], (latent_space, flat), flat)
    bl1 = _uniform(keys[9], (latent_space,), flat)
    Wl2 = _uniform(keys[10], (flat, latent_space), latent_space)
    bl2 = _uniform(keys[11], (flat,), latent_space)
    Wlc = _uniform(keys[12], (out_classes, flat), flat)
    blc = _uniform(keys[13], (out_classes,), flat)

    # --- lower convs / deconvs / upsample to dense matrices (channel-major) ---
    M1, B1, _ = conv1d_as_matrix(Wc1, bc1, L, s1)                   # (L,     c*L1)
    M2, B2, _ = conv1d_as_matrix(Wc2, bc2, L1, s2)                  # (c*L1,  2c*L2)
    Md1, Bd1, Ld1 = convtr1d_as_matrix(Wd1, bd1, latent_size, s2)   # (flat,  c*Ld1)
    Md2, Bd2, Ld2 = convtr1d_as_matrix(Wd2, bd2, Ld1, s1)           # (c*Ld1, Ld2)
    U = nearest_upsample_matrix(Ld2, L)                             # (Ld2, L)
    Md2U = Md2 @ U                                                  # fold Upsample
    Bd2U = Bd2 @ U

    # --- lane-friendly padding (all pad rows/cols are zero) ---
    L_pad = _rup(L, LANE)
    H1_pad = _rup(c * L1, LANE)
    FLAT_pad = _rup(flat, LANE)
    LAT_pad = _rup(latent_space, LANE)
    CLS_pad = _rup(out_classes, LANE)
    D1_pad = _rup(c * Ld1, LANE)

    M1p = _pad2(M1, L_pad, H1_pad)
    B1p = _pad2(B1[None, :], 1, H1_pad)
    M2p = _pad2(M2, H1_pad, FLAT_pad)
    B2p = _pad2(B2[None, :], 1, FLAT_pad)

    # fused [l1 | lc] head
    Wheadp = np.zeros((FLAT_pad, LAT_pad + CLS_pad), np.float32)
    Wheadp[:flat, :latent_space] = np.asarray(Wl1, np.float32).T
    Wheadp[:flat, LAT_pad:LAT_pad + out_classes] = np.asarray(Wlc, np.float32).T
    Bheadp = np.zeros((1, LAT_pad + CLS_pad), np.float32)
    Bheadp[0, :latent_space] = np.asarray(bl1, np.float32)
    Bheadp[0, LAT_pad:LAT_pad + out_classes] = np.asarray(blc, np.float32)
    Bheadp[0, LAT_pad + out_classes:] = NEG_INF    # mask padded classes for log_softmax

    W2tp = _pad2(np.asarray(Wl2, np.float32).T, LAT_pad, FLAT_pad)
    Bl2p = _pad2(np.asarray(bl2, np.float32)[None, :], 1, FLAT_pad)

    Md1p = _pad2(Md1, FLAT_pad, D1_pad)
    Bd1p = _pad2(Bd1[None, :], 1, D1_pad)
    Md2Up = _pad2(Md2U, D1_pad, L_pad)
    Bd2Up = _pad2(Bd2U[None, :], 1, L_pad)

    # --- fuse all six weights / biases into single lane-dense slabs ---
    sections = [(M1p, B1p), (M2p, B2p), (Wheadp, Bheadp),
                (W2tp, Bl2p), (Md1p, Bd1p), (Md2Up, Bd2Up)]
    K_pad = max(m.shape[0] for m, _ in sections)     # every K is a multiple of 128
    TOTAL_N = sum(m.shape[1] for m, _ in sections)   # every N is a multiple of 128
    Wslab = np.zeros((K_pad, TOTAL_N), np.float32)
    Bslab = np.zeros((1, TOTAL_N), np.float32)
    offsets, sec_dims, col = [], [], 0
    for m, b in sections:
        Wslab[:m.shape[0], col:col + m.shape[1]] = m
        Bslab[:, col:col + m.shape[1]] = b
        offsets.append(col)
        sec_dims.append((m.shape[0], m.shape[1]))
        col += m.shape[1]

    params = dict(W=jnp.asarray(Wslab, jnp.bfloat16),
                  B=jnp.asarray(Bslab, jnp.float32))
    meta = dict(L=L, L_pad=L_pad, out_classes=out_classes,
                LAT_pad=LAT_pad, CLS_pad=CLS_pad, FLAT_pad=FLAT_pad,
                H1_pad=H1_pad, D1_pad=D1_pad,
                K_pad=K_pad, TOTAL_N=TOTAL_N,
                offsets=tuple(offsets), sections=tuple(sec_dims))
    return params, meta


# ------------------------------- wrapper ----------------------------------- #
_FWD_CACHE = {}


def _make_forward_fn(TB, B_pad, meta):
    L, L_pad = meta["L"], meta["L_pad"]
    CLS_pad, out_classes = meta["CLS_pad"], meta["out_classes"]
    K_pad, TOTAL_N = meta["K_pad"], meta["TOTAL_N"]
    dims = (meta["L_pad"], meta["H1_pad"], meta["FLAT_pad"],
            meta["LAT_pad"], meta["CLS_pad"], meta["D1_pad"])
    OUT_W = L_pad + CLS_pad
    grid = (B_pad // TB,)

    # advisory cost estimate so XLA can schedule around the custom call
    mat_flops = 2 * B_pad * sum(k * n for k, n in meta["sections"])
    transcendentals = B_pad * (meta["FLAT_pad"] + meta["LAT_pad"]
                               + 2 * CLS_pad + L_pad)
    bytes_accessed = (B_pad * L_pad * 2            # bf16 input
                      + K_pad * TOTAL_N * 2        # bf16 weight slab
                      + TOTAL_N * 4                # f32 bias slab
                      + B_pad * OUT_W * 2)         # bf16 fused output

    call = pl.pallas_call(
        make_cae_kernel(meta["offsets"], dims),
        out_shape=jax.ShapeDtypeStruct((B_pad, OUT_W), jnp.bfloat16),
        grid_spec=pltpu.PrefetchScalarGridSpec(
            num_scalar_prefetch=0,
            grid=grid,
            in_specs=[pl.BlockSpec((TB, L_pad), lambda i: (i, 0)),
                      pl.BlockSpec((K_pad, TOTAL_N), lambda i: (0, 0)),
                      pl.BlockSpec((1, TOTAL_N), lambda i: (0, 0))],
            out_specs=pl.BlockSpec((TB, OUT_W), lambda i: (i, 0)),
        ),
        compiler_params=pltpu.CompilerParams(
            dimension_semantics=("parallel",),      # v7x: shard batch over both TCs
            vmem_limit_bytes=32 << 20),             # v5e default is 16 MiB; TB=512 needs headroom
        cost_estimate=pl.CostEstimate(
            flops=int(mat_flops),
            transcendentals=int(transcendentals),
            bytes_accessed=int(bytes_accessed)),
    )

    def fwd(X, wslab, bslab):
        bs = X.shape[0]
        # reshape / bf16-cast / pad fused into this jit (no extra HBM round trip)
        x = X.reshape(bs, L).astype(jnp.bfloat16)
        x = jnp.pad(x, ((0, B_pad - bs), (0, L_pad - L)))
        out = call(x, wslab, bslab)
        out_f32 = out[:bs].astype(jnp.float32)
        decoded = out_f32[:, :L].reshape(bs, 1, L)
        log_probs = out_f32[:, L_pad:L_pad + out_classes]
        return decoded, log_probs

    return jax.jit(fwd)


def conv_autoencoder_forward(X, params, meta):
    """X: (bs, 1, in_features) -> (decoded (bs,1,in_features), log_probs (bs,C))."""
    bs = X.shape[0]
    TB, B_pad = _batch_tiling(bs)
    key = (TB, B_pad, meta["L"], meta["TOTAL_N"], meta["offsets"])
    fwd = _FWD_CACHE.get(key)
    if fwd is None:
        fwd = _make_forward_fn(TB, B_pad, meta)
        _FWD_CACHE[key] = fwd
    return fwd(X, params["W"], params["B"])


# --------------------------------- main ------------------------------------ #
if __name__ == "__main__":
    in_features = 115      # conv lengths: 115 -> 19 -> 4 (latent_size=4, flat=16)
    out_classes = 3
    batch = 2

    key = jax.random.PRNGKey(0)
    kp, kx = jax.random.split(key)
    params, meta = make_params(kp, in_features, out_classes,
                               complexity=2, latent_space=16, kernel_base=5)

    X = jax.random.normal(kx, (batch, 1, in_features), jnp.float32)

    decoded, log_probs = conv_autoencoder_forward(X, params, meta)
    decoded = jax.block_until_ready(decoded)
    log_probs = jax.block_until_ready(log_probs)

    assert decoded.shape == (batch, 1, in_features)
    assert log_probs.shape == (batch, out_classes)
    assert bool(jnp.all(jnp.isfinite(decoded)))
    assert bool(jnp.all(jnp.isfinite(log_probs)))
    # tanh output stays in [-1, 1] (bf16-rounded)
    assert bool(jnp.all(jnp.abs(decoded) <= 1.0 + 1e-2))
    # log_softmax rows must sum to ~1 in prob space (bf16 output -> looser atol)
    assert bool(jnp.allclose(jnp.sum(jnp.exp(log_probs), axis=1), 1.0, atol=1e-2))
    print("KERNEL_OK")
</pallas_src>

<mosaic_0001>
module attributes {stable_mosaic.version = 11 : i64} {
  func.func @cae_kernel(%arg0: i32, %arg1: memref<8x128xbf16, #tpu.memory_space<vmem>>, %arg2: memref<128x896xbf16, #tpu.memory_space<vmem>>, %arg3: memref<1x896xf32, #tpu.memory_space<vmem>>, %arg4: memref<8x256xbf16, #tpu.memory_space<vmem>>) attributes {dimension_semantics = [#tpu.dimension_semantics<parallel>], iteration_bounds = array<i64: 1>, scalar_prefetch = 0 : i64, scratch_operands = 0 : i64, tpu.core_type = #tpu.core_type<tc>, window_params = [{transform_indices = @transform_0, window_bounds = array<i64: 8, 128>}, {pipeline_mode = #tpu.pipeline_mode<synchronous>, transform_indices = @transform_1, window_bounds = array<i64: 128, 896>}, {pipeline_mode = #tpu.pipeline_mode<synchronous>, transform_indices = @transform_2, window_bounds = array<i64: 1, 896>}, {transform_indices = @transform_3, window_bounds = array<i64: 8, 256>}]} {
    %c0 = arith.constant 0 : index
    %c0_0 = arith.constant 0 : index
    %0 = vector.load %arg1[%c0, %c0_0] : memref<8x128xbf16, #tpu.memory_space<vmem>>, vector<8x128xbf16>
    %c0_1 = arith.constant 0 : index
    %c0_2 = arith.constant 0 : index
    %1 = vector.load %arg2[%c0_1, %c0_2] : memref<128x896xbf16, #tpu.memory_space<vmem>>, vector<128x128xbf16>
    %cst = arith.constant dense<0.000000e+00> : vector<8x128xf32>
    %2 = tpu.matmul %0, %1, %cst {dimension_numbers = #tpu.dot_dimension_numbers<[1], [0], [0], [1], [0, 0, 1, 1], [], []>} : vector<8x128xbf16>, vector<128x128xbf16>, vector<8x128xf32> -> vector<8x128xf32>
    %c0_3 = arith.constant 0 : index
    %c0_4 = arith.constant 0 : index
    %3 = vector.load %arg3[%c0_3, %c0_4] : memref<1x896xf32, #tpu.memory_space<vmem>>, vector<1x128xf32>
    %4 = vector.broadcast %3 : vector<1x128xf32> to vector<8x128xf32>
    %5 = arith.addf %2, %4 : vector<8x128xf32>
    %cst_5 = arith.constant 0.000000e+00 : f32
    %6 = vector.broadcast %cst_5 : f32 to vector<8x128xf32>
    %7 = arith.maximumf %5, %6 : vector<8x128xf32>
    %8 = arith.truncf %7 : vector<8x128xf32> to vector<8x128xbf16>
    %c0_6 = arith.constant 0 : index
    %c128 = arith.constant 128 : index
    %9 = vector.load %arg2[%c0_6, %c128] : memref<128x896xbf16, #tpu.memory_space<vmem>>, vector<128x128xbf16>
    %cst_7 = arith.constant dense<0.000000e+00> : vector<8x128xf32>
    %10 = tpu.matmul %8, %9, %cst_7 {dimension_numbers = #tpu.dot_dimension_numbers<[1], [0], [0], [1], [0, 0, 1, 1], [], []>} : vector<8x128xbf16>, vector<128x128xbf16>, vector<8x128xf32> -> vector<8x128xf32>
    %c0_8 = arith.constant 0 : index
    %c128_9 = arith.constant 128 : index
    %11 = vector.load %arg3[%c0_8, %c128_9] : memref<1x896xf32, #tpu.memory_space<vmem>>, vector<1x128xf32>
    %12 = vector.broadcast %11 : vector<1x128xf32> to vector<8x128xf32>
    %13 = arith.addf %10, %12 : vector<8x128xf32>
    %14 = math.tanh %13 : vector<8x128xf32>
    %15 = arith.truncf %14 : vector<8x128xf32> to vector<8x128xbf16>
    %c0_10 = arith.constant 0 : index
    %c256 = arith.constant 256 : index
    %16 = vector.load %arg2[%c0_10, %c256] : memref<128x896xbf16, #tpu.memory_space<vmem>>, vector<128x256xbf16>
    %cst_11 = arith.constant dense<0.000000e+00> : vector<8x256xf32>
    %17 = tpu.matmul %15, %16, %cst_11 {dimension_numbers = #tpu.dot_dimension_numbers<[1], [0], [0], [1], [0, 0, 1, 1], [], []>} : vector<8x128xbf16>, vector<128x256xbf16>, vector<8x256xf32> -> vector<8x256xf32>
    %c0_12 = arith.constant 0 : index
    %c256_13 = arith.constant 256 : index
    %18 = vector.load %arg3[%c0_12, %c256_13] : memref<1x896xf32, #tpu.memory_space<vmem>>, vector<1x256xf32>
    %19 = vector.broadcast %18 : vector<1x256xf32> to vector<8x256xf32>
    %20 = arith.addf %17, %19 : vector<8x256xf32>
    %21 = vector.extract_strided_slice %20 {offsets = [0, 0], sizes = [8, 128], strides = [1, 1]} : vector<8x256xf32> to vector<8x128xf32>
    %22 = math.tanh %21 : vector<8x128xf32>
    %23 = vector.extract_strided_slice %20 {offsets = [0, 128], sizes = [8, 128], strides = [1, 1]} : vector<8x256xf32> to vector<8x128xf32>
    %cst_14 = arith.constant dense<0xFF800000> : vector<8xf32>
    %24 = vector.multi_reduction <maximumf>, %23, %cst_14 [1] : vector<8x128xf32> to vector<8xf32>
    %25 = vector.shape_cast %24 : vector<8xf32> to vector<8x1xf32>
    %26 = vector.broadcast %25 : vector<8x1xf32> to vector<8x128xf32>
    %27 = arith.subf %23, %26 : vector<8x128xf32>
    %28 = math.exp %27 : vector<8x128xf32>
    %cst_15 = arith.constant dense<0.000000e+00> : vector<8xf32>
    %29 = vector.multi_reduction <add>, %28, %cst_15 [1] : vector<8x128xf32> to vector<8xf32>
    %30 = vector.shape_cast %29 : vector<8xf32> to vector<8x1xf32>
    %31 = math.log %30 : vector<8x1xf32>
    %32 = arith.addf %25, %31 : vector<8x1xf32>
    %33 = vector.broadcast %32 : vector<8x1xf32> to vector<8x128xf32>
    %34 = arith.subf %23, %33 : vector<8x128xf32>
    %35 = arith.truncf %22 : vector<8x128xf32> to vector<8x128xbf16>
    %c0_16 = arith.constant 0 : index
    %c512 = arith.constant 512 : index
    %36 = vector.load %arg2[%c0_16, %c512] : memref<128x896xbf16, #tpu.memory_space<vmem>>, vector<128x128xbf16>
    %cst_17 = arith.constant dense<0.000000e+00> : vector<8x128xf32>
    %37 = tpu.matmul %35, %36, %cst_17 {dimension_numbers = #tpu.dot_dimension_numbers<[1], [0], [0], [1], [0, 0, 1, 1], [], []>} : vector<8x128xbf16>, vector<128x128xbf16>, vector<8x128xf32> -> vector<8x128xf32>
    %c0_18 = arith.constant 0 : index
    %c512_19 = arith.constant 512 : index
    %38 = vector.load %arg3[%c0_18, %c512_19] : memref<1x896xf32, #tpu.memory_space<vmem>>, vector<1x128xf32>
    %39 = vector.broadcast %38 : vector<1x128xf32> to vector<8x128xf32>
    %40 = arith.addf %37, %39 : vector<8x128xf32>
    %cst_20 = arith.constant 0.000000e+00 : f32
    %41 = vector.broadcast %cst_20 : f32 to vector<8x128xf32>
    %42 = arith.maximumf %40, %41 : vector<8x128xf32>
    %43 = arith.truncf %42 : vector<8x128xf32> to vector<8x128xbf16>
    %c0_21 = arith.constant 0 : index
    %c640 = arith.constant 640 : index
    %44 = vector.load %arg2[%c0_21, %c640] : memref<128x896xbf16, #tpu.memory_space<vmem>>, vector<128x128xbf16>
    %cst_22 = arith.constant dense<0.000000e+00> : vector<8x128xf32>
    %45 = tpu.matmul %43, %44, %cst_22 {dimension_numbers = #tpu.dot_dimension_numbers<[1], [0], [0], [1], [0, 0, 1, 1], [], []>} : vector<8x128xbf16>, vector<128x128xbf16>, vector<8x128xf32> -> vector<8x128xf32>
    %c0_23 = arith.constant 0 : index
    %c640_24 = arith.constant 640 : index
    %46 = vector.load %arg3[%c0_23, %c640_24] : memref<1x896xf32, #tpu.memory_space<vmem>>, vector<1x128xf32>
    %47 = vector.broadcast %46 : vector<1x128xf32> to vector<8x128xf32>
    %48 = arith.addf %45, %47 : vector<8x128xf32>
    %cst_25 = arith.constant 0.000000e+00 : f32
    %49 = vector.broadcast %cst_25 : f32 to vector<8x128xf32>
    %50 = arith.maximumf %48, %49 : vector<8x128xf32>
    %51 = arith.truncf %50 : vector<8x128xf32> to vector<8x128xbf16>
    %c0_26 = arith.constant 0 : index
    %c768 = arith.constant 768 : index
    %52 = vector.load %arg2[%c0_26, %c768] : memref<128x896xbf16, #tpu.memory_space<vmem>>, vector<128x128xbf16>
    %cst_27 = arith.constant dense<0.000000e+00> : vector<8x128xf32>
    %53 = tpu.matmul %51, %52, %cst_27 {dimension_numbers = #tpu.dot_dimension_numbers<[1], [0], [0], [1], [0, 0, 1, 1], [], []>} : vector<8x128xbf16>, vector<128x128xbf16>, vector<8x128xf32> -> vector<8x128xf32>
    %c0_28 = arith.constant 0 : index
    %c768_29 = arith.constant 768 : index
    %54 = vector.load %arg3[%c0_28, %c768_29] : memref<1x896xf32, #tpu.memory_space<vmem>>, vector<1x128xf32>
    %55 = vector.broadcast %54 : vector<1x128xf32> to vector<8x128xf32>
    %56 = arith.addf %53, %55 : vector<8x128xf32>
    %57 = math.tanh %56 : vector<8x128xf32>
    %58 = arith.truncf %57 : vector<8x128xf32> to vector<8x128xbf16>
    %c0_30 = arith.constant 0 : index
    %c0_31 = arith.constant 0 : index
    %59 = vector.load %arg4[%c0_30, %c0_31] : memref<8x256xbf16, #tpu.memory_space<vmem>>, vector<8x128xbf16>
    tpu.vector_store %arg4[%c0_30, %c0_31], %58 {strides = array<i32>} : memref<8x256xbf16, #tpu.memory_space<vmem>>, vector<8x128xbf16>,
    %60 = arith.truncf %34 : vector<8x128xf32> to vector<8x128xbf16>
    %c0_32 = arith.constant 0 : index
    %c128_33 = arith.constant 128 : index
    %61 = vector.load %arg4[%c0_32, %c128_33] : memref<8x256xbf16, #tpu.memory_space<vmem>>, vector<8x128xbf16>
    tpu.vector_store %arg4[%c0_32, %c128_33], %60 {strides = array<i32>} : memref<8x256xbf16, #tpu.memory_space<vmem>>, vector<8x128xbf16>,
    return
  }
  func.func @transform_0(%arg0: i32) -> (i32, i32) {
    %c0_i32 = arith.constant 0 : i32
    %c0_i32_0 = arith.constant 0 : i32
    return %arg0, %c0_i32 : i32, i32
  }
  func.func @transform_1(%arg0: i32) -> (i32, i32) {
    %c0_i32 = arith.constant 0 : i32
    %c0_i32_0 = arith.constant 0 : i32
    %c0_i32_1 = arith.constant 0 : i32
    return %c0_i32, %c0_i32_0 : i32, i32
  }
  func.func @transform_2(%arg0: i32) -> (i32, i32) {
    %c0_i32 = arith.constant 0 : i32
    %c0_i32_0 = arith.constant 0 : i32
    %c0_i32_1 = arith.constant 0 : i32
    return %c0_i32, %c0_i32_0 : i32, i32
  }
  func.func @transform_3(%arg0: i32) -> (i32, i32) {
    %c0_i32 = arith.constant 0 : i32
    %c0_i32_0 = arith.constant 0 : i32
    return %arg0, %c0_i32 : i32, i32
  }
}

</mosaic_0001>

<bundles_post_ra>
// kernel: fwd.1
= control target key start
LH: loop header
LB: loop body
LE: loop exit
PB: predicated region body
PF: predicated region fallthrough
CT: control target
= control target key end

     0   :  { %8 = vsyncpa [#allocation3], 0  ;;  %s1080_s12 = smov [#allocation2]   ;;  %s1197_s0 = inlined_call_operand.vmem [shape: bf16[8,128], index: 0, kind: input, shape index: {}]   ;;  %s1198_s1 = inlined_call_operand.hbm [shape: bf16[128,896], index: 1, kind: input, shape index: {}]   ;;  %s1199_s2 = inlined_call_operand.vmem [shape: f32[1,896], index: 2, kind: input, shape index: {}]   ;;  %s1200_s3 = inlined_call_operand.vmem [shape: bf16[8,256], index: 3, kind: output, shape index: {}]  }
   0x1   :  { %s16_s13 = sshll.u32 %s1080_s12, 4  ;;  %s1056_s16 = scalar_lea.hbm %s1198_s1, 7168  ;;  %s17_s13 = int_to_ptr.vmem [resolvable:$true] %s16_s13 }
   0x2   :  { %p1057_p0 = scmp.ne.s32.totalorder %s1198_s1, %s1056_s16  ;;  %p1060_p1 = scmp.lt.u32.totalorder %s1056_s16, %s1198_s1 }
   0x4   :  { %p1062_p2 = pnand %p1060_p1, %p1057_p0 }
   0x6   :  { %1065 = shalt.err (!%p1062_p2)
}
   0x7   :  { %s1066_s21 = scalar_lea.vmem %s17_s13, 7168  ;;  %p1071_p4 = scmp.lt.s32.totalorder %s17_s13, %s17_s13 }
   0x8   :  { %p1067_p3 = scmp.ne.s32.totalorder %s17_s13, %s1066_s21  ;;  %p1072_p5 = scmp.lt.s32.totalorder %s1066_s21, %s1066_s21 }
   0xa   :  { %p1073_p6 = por %p1072_p5, %p1071_p4 }
   0xc   :  { %p1074_p7 = pnand %p1073_p6, %p1067_p3 }
   0xe   :  { %1077 = shalt.err (!%p1074_p7)
}
   0xf   :  { %s1081_s22 = smov 448   ;;  %s1082_s23 = smov 28  }
  0x10   :  { %22 = dma.hbm_to_vmem [thread:$0]  %s1198_s1, 7168, %s17_s13, [#allocation3], %s1081_s22, %s1081_s22, %s1082_s23  }
  0x11   :  { %1078 = dma.done.wait [#allocation3], 7168  }
  0x12   :  { %1079 = vsyncadd [#allocation3], 4294960128  ;;  %v1083_v0 = vmov 0.0   ;;  %vm1084_vm0 = vmmov 0   ;;  %v982_v1 = vld [vmem:[#allocation2] ss:$28 sps:$4 sm:$0xff]   ;;  %v274_v59 = vlaneseq }
  0x13   :  { %876 = vmatprep.subr.bf16.mxu0 %v1083_v0  ;;  %892 = vmatprep.mubr.msk.bf16.mxu0 %vm1084_vm0, %v1083_v0  ;;  %v983_v2 = vld [vmem:[#allocation2 + $0x38] ss:$28 sps:$4 sm:$0xff]   ;;  %v984_v3 = vld [vmem:[#allocation2 + $0x70] ss:$28 sps:$4 sm:$0xff]   ;;  %v990_v4 = vld [vmem:[#allocation2 + $0x4] ss:$28 sps:$4 sm:$0xff]  }
  0x14   :  { %896 = vmatprep.subr.bf16.mxu1 %v1083_v0  ;;  %912 = vmatprep.mubr.msk.bf16.mxu1 %vm1084_vm0, %v1083_v0  ;;  %v985_v5 = vld [vmem:[#allocation2 + $0xa8] ss:$28 sps:$4 sm:$0xff]   ;;  %v991_v6 = vld [vmem:[#allocation2 + $0x3c] ss:$28 sps:$4 sm:$0xff]   ;;  %v992_v8 = vld [vmem:[#allocation2 + $0x74] ss:$28 sps:$4 sm:$0xff]  }
  0x15   :  { %877 = vmatpush3.bf16.msra.mxu0 %v982_v1  ;;  %897 = vmatpush3.bf16.msra.mxu1 %v990_v4  ;;  %v986_v7 = vld [vmem:[#allocation2 + $0xe0] ss:$28 sps:$4 sm:$0xff]   ;;  %v987_v9 = vld [vmem:[#allocation2 + $0x118] ss:$28 sps:$4 sm:$0xff]   ;;  %v993_v10 = vld [vmem:[#allocation2 + $0xac] ss:$28 sps:$4 sm:$0xff]  }
  0x16   :  { %878 = vmatprep.subr.bf16.mxu0 %v1083_v0  ;;  %898 = vmatprep.subr.bf16.mxu1 %v1083_v0  ;;  %v988_v11 = vld [vmem:[#allocation2 + $0x150] ss:$28 sps:$4 sm:$0xff]   ;;  %v994_v12 = vld [vmem:[#allocation2 + $0xe4] ss:$28 sps:$4 sm:$0xff]   ;;  %v995_v14 = vld [vmem:[#allocation2 + $0x11c] ss:$28 sps:$4 sm:$0xff]  }
  0x17   :  { %v989_v13 = vld [vmem:[#allocation2 + $0x188] ss:$28 sps:$4 sm:$0xff]   ;;  %v29_v15 = vld [vmem:[%s1197_s0] sm:$0xf]  ;;  %v996_v16 = vld [vmem:[#allocation2 + $0x154] ss:$28 sps:$4 sm:$0xff]  }
  0x18   :  { %v997_v17 = vld [vmem:[#allocation2 + $0x18c] ss:$28 sps:$4 sm:$0xff]   ;;  %v1003_v20 = vld [vmem:[#allocation2 + $0x44] ss:$28 sps:$4 sm:$0xff]   ;;  %v1006_v22 = vld [vmem:[#allocation2 + $0x7c] ss:$28 sps:$4 sm:$0xff]  }
  0x19   :  { %879 = vmatpush3.bf16.msra.mxu0 %v983_v2  ;;  %899 = vmatpush3.bf16.msra.mxu1 %v991_v6  ;;  %v998_v18 = vld [vmem:[#allocation2 + $0x8] ss:$28 sps:$4 sm:$0xff]   ;;  %v1001_v21 = vld [vmem:[#allocation2 + $0x40] ss:$28 sps:$4 sm:$0xff]   ;;  %v1004_v23 = vld [vmem:[#allocation2 + $0x78] ss:$28 sps:$4 sm:$0xff]  }
  0x1a   :  { %880 = vmatprep.subr.bf16.mxu0 %v1083_v0  ;;  %900 = vmatprep.subr.bf16.mxu1 %v1083_v0  ;;  %v1000_v19 = vld [vmem:[#allocation2 + $0xc] ss:$28 sps:$4 sm:$0xff]   ;;  %v1009_v24 = vld [vmem:[#allocation2 + $0xb4] ss:$28 sps:$4 sm:$0xff]   ;;  %v765_v26 = vld [vmem:[%s1199_s2] ss:$0 sm:$0xff] }
  0x1b   :  { %v1007_v25 = vld [vmem:[#allocation2 + $0xb0] ss:$28 sps:$4 sm:$0xff]   ;;  %v1010_v35 = vld [vmem:[#allocation2 + $0xe8] ss:$28 sps:$4 sm:$0xff]   ;;  %v1013_v37 = vld [vmem:[#allocation2 + $0x120] ss:$28 sps:$4 sm:$0xff]  }
  0x1c   :  { %v1012_v34 = vld [vmem:[#allocation2 + $0xec] ss:$28 sps:$4 sm:$0xff]   ;;  %v1015_v36 = vld [vmem:[#allocation2 + $0x124] ss:$28 sps:$4 sm:$0xff]   ;;  %v1018_v38 = vld [vmem:[#allocation2 + $0x15c] ss:$28 sps:$4 sm:$0xff]  }
  0x1d   :  { %881 = vmatpush3.bf16.msra.mxu0 %v984_v3  ;;  %901 = vmatpush3.bf16.msra.mxu1 %v992_v8  ;;  %v1016_v39 = vld [vmem:[#allocation2 + $0x158] ss:$28 sps:$4 sm:$0xff]   ;;  %v1019_v41 = vld [vmem:[#allocation2 + $0x190] ss:$28 sps:$4 sm:$0xff]   ;;  %v1085_v42 = vmov 0   ;;  %v275_v60 = vshrl.u32 %v274_v59, 7 }
  0x1e   :  { %882 = vmatprep.subr.bf16.mxu0 %v1083_v0  ;;  %902 = vmatprep.subr.bf16.mxu1 %v1083_v0  ;;  %v1021_v40 = vld [vmem:[#allocation2 + $0x194] ss:$28 sps:$4 sm:$0xff]   ;;  %v1023_v44 = vld [vmem:[#allocation2 + $0x48] ss:$28 sps:$4 sm:$0xff]   ;;  %v1024_v45 = vld [vmem:[#allocation2 + $0x80] ss:$28 sps:$4 sm:$0xff]  }
  0x1f   :  { %v1022_v43 = vld [vmem:[#allocation2 + $0x10] ss:$28 sps:$4 sm:$0xff]   ;;  %v1025_v46 = vld [vmem:[#allocation2 + $0xb8] ss:$28 sps:$4 sm:$0xff]   ;;  %v774_v47 = vld [vmem:[%s1199_s2 + $0x1] ss:$0 sm:$0xff] }
  0x20   :  { %v1026_v55 = vld [vmem:[#allocation2 + $0xf0] ss:$28 sps:$4 sm:$0xff]   ;;  %v1027_v56 = vld [vmem:[#allocation2 + $0x128] ss:$28 sps:$4 sm:$0xff]   ;;  %v1028_v57 = vld [vmem:[#allocation2 + $0x160] ss:$28 sps:$4 sm:$0xff]  }
  0x21   :  { %883 = vmatpush3.bf16.msra.mxu0 %v985_v5  ;;  %903 = vmatpush3.bf16.msra.mxu1 %v993_v10  ;;  %v1029_v58 = vld [vmem:[#allocation2 + $0x198] ss:$28 sps:$4 sm:$0xff]   ;;  %v276_v61 = vsub.s32 0, %v275_v60  ;;  %v272_v62 = vld [vmem:[%s1199_s2 + $0x2] sm:$0x3]  ;;  %v280_v63 = vsub.s32 1, %v275_v60 }
  0x22   :  { %884 = vmatprep.subr.bf16.mxu0 %v1083_v0  ;;  %904 = vmatprep.subr.bf16.mxu1 %v1083_v0 }
  0x23   :  { %v277_v1 = vrot.slane %v272_v62, %v276_v61  ;;  %v281_v2 = vrot.slane %v272_v62, %v280_v63 }
  0x25   :  { %885 = vmatpush3.bf16.msra.mxu0 %v986_v7  ;;  %905 = vmatpush3.bf16.msra.mxu1 %v994_v12  ;;  %v1031_v12 = vld [vmem:[#allocation2 + $0x4c] ss:$28 sps:$4 sm:$0xff]  }
  0x26   :  { %886 = vmatprep.subr.bf16.mxu0 %v1083_v0  ;;  %906 = vmatprep.subr.bf16.mxu1 %v1083_v0 }
  0x29   :  { %887 = vmatpush3.bf16.msra.mxu0 %v987_v9  ;;  %907 = vmatpush3.bf16.msra.mxu1 %v995_v14  ;;  %v1033_v14 = vld [vmem:[#allocation2 + $0xbc] ss:$28 sps:$4 sm:$0xff]  }
  0x2a   :  { %888 = vmatprep.subr.bf16.mxu0 %v1083_v0  ;;  %908 = vmatprep.subr.bf16.mxu1 %v1083_v0 }
  0x2d   :  { %889 = vmatpush3.bf16.msra.mxu0 %v988_v11  ;;  %909 = vmatpush3.bf16.msra.mxu1 %v996_v16  ;;  %v1030_v11 = vld [vmem:[#allocation2 + $0x14] ss:$28 sps:$4 sm:$0xff]   ;;  %v1035_v16 = vld [vmem:[#allocation2 + $0x12c] ss:$28 sps:$4 sm:$0xff]  }
  0x2e   :  { %890 = vmatprep.subr.bf16.mxu0 %v1083_v0  ;;  %910 = vmatprep.subr.bf16.mxu1 %v1083_v0 }
  0x31   :  { %891 = vmatpush3.bf16.msra.mxu0 %v989_v13  ;;  %911 = vmatpush3.bf16.msra.mxu1 %v997_v17  ;;  %v1032_v13 = vld [vmem:[#allocation2 + $0x84] ss:$28 sps:$4 sm:$0xff]  }
  0x32   :  { %916 = vmatprep.subr.bf16.mxu1 %v1083_v0  ;;  %364 = vmatprep.subr.bf16.mxu0 %v1000_v19  ;;  %v1036_v17 = vld [vmem:[#allocation2 + $0x164] ss:$28 sps:$4 sm:$0xff]  }
  0x34   :  { %893 = vmatmul.mubr.bf16.vlgmr.msra.gmra.mrb[0].mxu0 %v29_v15  ;;  %v1034_v15 = vld [vmem:[#allocation2 + $0xf4] ss:$28 sps:$4 sm:$0xff]  }
  0x35   :  { %365 = vmatpush1.bf16.msra.mxu0 %v998_v18  ;;  %396 = vmatprep.mubr.bf16.mxu0 %v1085_v42  ;;  %v1037_v18 = vld [vmem:[#allocation2 + $0x19c] ss:$28 sps:$4 sm:$0xff]  }
  0x36   :  { %366 = vmatprep.subr.bf16.mxu0 %v1003_v20 }
  0x39   :  { %367 = vmatpush1.bf16.msra.mxu0 %v1001_v21 }
  0x3a   :  { %368 = vmatprep.subr.bf16.mxu0 %v1006_v22 }
  0x3d   :  { %369 = vmatpush1.bf16.msra.mxu0 %v1004_v23  ;;  %v1038_v23 = vld [vmem:[#allocation2 + $0x18] ss:$28 sps:$4 sm:$0xff]  }
  0x3e   :  { %370 = vmatprep.subr.bf16.mxu0 %v1009_v24  ;;  %v1039_v24 = vld [vmem:[#allocation2 + $0x50] ss:$28 sps:$4 sm:$0xff]  }
  0x41   :  { %371 = vmatpush1.bf16.msra.mxu0 %v1007_v25  ;;  %v1040_v25 = vld [vmem:[#allocation2 + $0x88] ss:$28 sps:$4 sm:$0xff]  }
  0x42   :  { %372 = vmatprep.subr.bf16.mxu0 %v1012_v34 }
  0x45   :  { %373 = vmatpush1.bf16.msra.mxu0 %v1010_v35 }
  0x46   :  { %374 = vmatprep.subr.bf16.mxu0 %v1015_v36 }
  0x49   :  { %375 = vmatpush1.bf16.msra.mxu0 %v1013_v37  ;;  %v1044_v37 = vld [vmem:[#allocation2 + $0x168] ss:$28 sps:$4 sm:$0xff]  }
  0x4a   :  { %376 = vmatprep.subr.bf16.mxu0 %v1018_v38  ;;  %v1045_v38 = vld [vmem:[#allocation2 + $0x1a0] ss:$28 sps:$4 sm:$0xff]  }
  0x4d   :  { %377 = vmatpush1.bf16.msra.mxu0 %v1016_v39  ;;  %v808_v39 = vld [vmem:[%s1199_s2 + $0x5] ss:$0 sm:$0xff] }
  0x4e   :  { %378 = vmatprep.subr.bf16.mxu0 %v1021_v40 }
  0x51   :  { %379 = vmatpush1.bf16.msra.mxu0 %v1019_v41 }
  0x52   :  { %936 = vmatprep.subr.bf16.mxu0 %v1083_v0 }
 0x107   :  { %v135_v27 = vpop.f32.mrb[0].mxu0 }
 0x108   :  { %v136_v28 = vadd.f32 %v765_v26, %v135_v27  ;;  %v894_v29 = vpop.f32.mrb[1].mxu0  ;;  %v1041_v26 = vld [vmem:[#allocation2 + $0xc0] ss:$28 sps:$4 sm:$0xff]   ;;  %v1042_v27 = vld [vmem:[#allocation2 + $0xf8] ss:$28 sps:$4 sm:$0xff]  }
 0x109   :  { %v138_v30 = vpop.f32.mrb[2].mxu0  ;;  %v799_v29 = vld [vmem:[%s1199_s2 + $0x4] ss:$0 sm:$0xff] }
 0x10a   :  { %v141_v31 = vmax.f32 %v136_v28, 0.0  ;;  %v895_v32 = vpop.f32.mrb[3].mxu0  ;;  %v1043_v28 = vld [vmem:[#allocation2 + $0x130] ss:$28 sps:$4 sm:$0xff]  }
 0x10c   :  { %v142_v33 = vpack.c.bf16 %v141_v31, %v141_v31 }
 0x10e   :  { %913 = vmatmul.mubr.bf16.vlgmr.msra.gmra.mrb[0].mxu1 %v142_v33 }
 0x10f   :  { %932 = vmatprep.mubr.msk.bf16.mxu1 %vm1084_vm0, %v1083_v0  ;;  %917 = vmatpush3.bf16.msra.mxu1 %v1022_v43 }
 0x110   :  { %918 = vmatprep.subr.bf16.mxu1 %v1083_v0 }
 0x113   :  { %919 = vmatpush3.bf16.msra.mxu1 %v1023_v44 }
 0x114   :  { %920 = vmatprep.subr.bf16.mxu1 %v1083_v0 }
 0x117   :  { %921 = vmatpush3.bf16.msra.mxu1 %v1024_v45 }
 0x118   :  { %922 = vmatprep.subr.bf16.mxu1 %v1083_v0 }
 0x11b   :  { %923 = vmatpush3.bf16.msra.mxu1 %v1025_v46 }
 0x11c   :  { %924 = vmatprep.subr.bf16.mxu1 %v1083_v0 }
 0x11f   :  { %925 = vmatpush3.bf16.msra.mxu1 %v1026_v55 }
 0x120   :  { %926 = vmatprep.subr.bf16.mxu1 %v1083_v0 }
 0x123   :  { %927 = vmatpush3.bf16.msra.mxu1 %v1027_v56 }
 0x124   :  { %928 = vmatprep.subr.bf16.mxu1 %v1083_v0 }
 0x127   :  { %929 = vmatpush3.bf16.msra.mxu1 %v1028_v57 }
 0x128   :  { %930 = vmatprep.subr.bf16.mxu1 %v1083_v0 }
 0x12b   :  { %931 = vmatpush3.bf16.msra.mxu1 %v1029_v58 }
 0x12c   :  { %956 = vmatprep.subr.bf16.mxu1 %v1083_v0 }
 0x1e1   :  { %v248_v48 = vpop.f32.mrb[0].mxu1 }
 0x1e2   :  { %v249_v49 = vadd.f32 %v774_v47, %v248_v48  ;;  %v914_v50 = vpop.f32.mrb[1].mxu1 }
 0x1e3   :  { %v251_v51 = vpop.f32.mrb[2].mxu1 }
 0x1e4   :  { %1046 = vtanh.f32 %v249_v49  ;;  %v915_v52 = vpop.f32.mrb[3].mxu1 }
 0x1ee   :  { %v1047_v53 = vpop.eup %1046 }
 0x1ef   :  { %v255_v54 = vpack.c.bf16 %v1047_v53, %v1047_v53 }
 0x1f1   :  { %397 = vmatmul.mubr.bf16.vlgmr.msra.gmra.mrb[4].mxu0 %v255_v54 }
 0x1f2   :  { %952 = vmatprep.mubr.msk.bf16.mxu0 %vm1084_vm0, %v1083_v0  ;;  %937 = vmatpush3.bf16.msra.mxu0 %v1030_v11 }
 0x1f3   :  { %938 = vmatprep.subr.bf16.mxu0 %v1083_v0 }
 0x1f6   :  { %939 = vmatpush3.bf16.msra.mxu0 %v1031_v12 }
 0x1f7   :  { %940 = vmatprep.subr.bf16.mxu0 %v1083_v0 }
 0x1fa   :  { %941 = vmatpush3.bf16.msra.mxu0 %v1032_v13 }
 0x1fb   :  { %942 = vmatprep.subr.bf16.mxu0 %v1083_v0 }
 0x1fe   :  { %943 = vmatpush3.bf16.msra.mxu0 %v1033_v14 }
 0x1ff   :  { %944 = vmatprep.subr.bf16.mxu0 %v1083_v0 }
 0x202   :  { %945 = vmatpush3.bf16.msra.mxu0 %v1034_v15 }
 0x203   :  { %946 = vmatprep.subr.bf16.mxu0 %v1083_v0 }
 0x206   :  { %947 = vmatpush3.bf16.msra.mxu0 %v1035_v16 }
 0x207   :  { %948 = vmatprep.subr.bf16.mxu0 %v1083_v0 }
 0x20a   :  { %949 = vmatpush3.bf16.msra.mxu0 %v1036_v17 }
 0x20b   :  { %950 = vmatprep.subr.bf16.mxu0 %v1083_v0 }
 0x20e   :  { %951 = vmatpush3.bf16.msra.mxu0 %v1037_v18 }
 0x2c4   :  { %v398_v3 = vpop.f32.mrb[4].mxu0 }
 0x2c5   :  { %v399_v4 = vadd.f32 %v398_v3, %v277_v1  ;;  %v400_v5 = vpop.f32.mrb[5].mxu0 }
 0x2c6   :  { %v1164_v6 = vadd.f32 %v400_v5, %v281_v2  ;;  %v402_v7 = vpop.f32.mrb[6].mxu0 }
 0x2c7   :  { %1048 = vtanh.f32 %v399_v4  ;;  %v403_v8 = vpop.f32.mrb[7].mxu0 }
 0x2c8   :  { %406 = vmax.xlane.f32.xlu0 %v1164_v6 }
 0x2d1   :  { %v1049_v9 = vpop.eup %1048 }
 0x2d2   :  { %v417_v10 = vpack.c.bf16 %v1049_v9, %v1049_v9 }
 0x2d4   :  { %933 = vmatmul.mubr.bf16.vlgmr.msra.gmra.mrb[4].mxu1 %v417_v10 }
 0x2d5   :  { %972 = vmatprep.mubr.msk.bf16.mxu1 %vm1084_vm0, %v1083_v0  ;;  %957 = vmatpush3.bf16.msra.mxu1 %v1038_v23 }
 0x2d6   :  { %958 = vmatprep.subr.bf16.mxu1 %v1083_v0 }
 0x2d9   :  { %959 = vmatpush3.bf16.msra.mxu1 %v1039_v24 }
 0x2da   :  { %960 = vmatprep.subr.bf16.mxu1 %v1083_v0 }
 0x2dd   :  { %961 = vmatpush3.bf16.msra.mxu1 %v1040_v25 }
 0x2de   :  { %962 = vmatprep.subr.bf16.mxu1 %v1083_v0 }
 0x2e1   :  { %963 = vmatpush3.bf16.msra.mxu1 %v1041_v26 }
 0x2e2   :  { %964 = vmatprep.subr.bf16.mxu1 %v1083_v0 }
 0x2e5   :  { %965 = vmatpush3.bf16.msra.mxu1 %v1042_v27 }
 0x2e6   :  { %966 = vmatprep.subr.bf16.mxu1 %v1083_v0 }
 0x2e9   :  { %967 = vmatpush3.bf16.msra.mxu1 %v1043_v28 }
 0x2ea   :  { %968 = vmatprep.subr.bf16.mxu1 %v1083_v0 }
 0x2ed   :  { %969 = vmatpush3.bf16.msra.mxu1 %v1044_v37 }
 0x2ee   :  { %970 = vmatprep.subr.bf16.mxu1 %v1083_v0  ;;  %v817_v0 = vld [vmem:[%s1199_s2 + $0x6] ss:$0 sm:$0xff] }
 0x2f1   :  { %971 = vmatpush3.bf16.msra.mxu1 %v1045_v38 }
 0x355   :  { %v407_v19 = vpop.xlane.xlu0 %406 }
 0x356   :  { %v408_v20 = vsub.f32 %v1164_v6, %v407_v19 }
 0x358   :  { %v409_v21 = vmul.f32 1.442695, %v408_v20 }
 0x35a   :  { %1050 = vpow2.f32 %v409_v21 }
 0x364   :  { %v1051_v22 = vpop.eup %1050 }
 0x365   :  { %411 = vadd.xlane.f32.xlu0 %v1051_v22 }
 0x3a7   :  { %v523_v30 = vpop.f32.mrb[4].mxu1 }
 0x3a8   :  { %v524_v31 = vadd.f32 %v799_v29, %v523_v30  ;;  %v934_v32 = vpop.f32.mrb[5].mxu1 }
 0x3a9   :  { %v526_v33 = vpop.f32.mrb[6].mxu1 }
 0x3aa   :  { %v529_v34 = vmax.f32 %v524_v31, 0.0  ;;  %v935_v35 = vpop.f32.mrb[7].mxu1 }
 0x3ac   :  { %v530_v36 = vpack.c.bf16 %v529_v34, %v529_v34 }
 0x3ae   :  { %953 = vmatmul.mubr.bf16.vlgmr.msra.gmra.mrb[8].mxu0 %v530_v36 }
 0x3f2   :  { %v412_v47 = vpop.xlane.xlu0 %411 }
 0x3f3   :  { %1052 = vlog2.f32 %v412_v47 }
 0x3fd   :  { %v1053_v49 = vpop.eup %1052 }
 0x3fe   :  { %v414_v54 = vmul.f32 0.6931472, %v1053_v49 }
 0x400   :  { %v415_v55 = vadd.f32 %v414_v54, %v407_v19 }
 0x402   :  { %v416_v56 = vsub.f32 %v1164_v6, %v415_v55 }
 0x481   :  { %v636_v40 = vpop.f32.mrb[8].mxu0 }
 0x482   :  { %v637_v41 = vadd.f32 %v808_v39, %v636_v40  ;;  %v954_v42 = vpop.f32.mrb[9].mxu0 }
 0x483   :  { %v639_v43 = vpop.f32.mrb[10].mxu0 }
 0x484   :  { %v642_v44 = vmax.f32 %v637_v41, 0.0  ;;  %v955_v45 = vpop.f32.mrb[11].mxu0 }
 0x486   :  { %v643_v46 = vpack.c.bf16 %v642_v44, %v642_v44 }
 0x488   :  { %973 = vmatmul.mubr.bf16.vlgmr.msra.gmra.mrb[8].mxu1 %v643_v46 }
 0x55b   :  { %v749_v48 = vpop.f32.mrb[8].mxu1 }
 0x55c   :  { %v750_v50 = vadd.f32 %v817_v0, %v749_v48  ;;  %v974_v51 = vpop.f32.mrb[9].mxu1 }
 0x55d   :  { %v752_v52 = vpop.f32.mrb[10].mxu1 }
 0x55e   :  { %1054 = vtanh.f32 %v750_v50  ;;  %v975_v53 = vpop.f32.mrb[11].mxu1 }
 0x568   :  { %v1055_v57 = vpop.eup %1054 }
 0x569   :  { %v829_v58 = vpack.c.bf16 %v416_v56, %v1055_v57 }
 0x56b   :  { %830 = vst [vmem:[%s1200_s3] sm:$0xff] %v829_v58  }
 0x56c   :  { %764 = vsyncpa [#allocation3], 1 }

</bundles_post_ra>
